<compile_context>
chip_gen: v5e
topology: v5e:2x2
jax: 0.10.0
libtpu: 0.0.40
codegen_flags: <defaults>
</compile_context>

<pallas_src>
import math
import functools

import jax
import jax.numpy as jnp
from jax.experimental import pallas as pl
from jax.experimental.pallas import tpu as pltpu


_LANES = 128                        # vreg lane width
_SUBLANES = 8                       # vreg sublane count
_TILE = _LANES * _SUBLANES          # 1024 = one full f32 vreg
_MAX_BLOCK_ELEMS = 2 * 1024 * 1024  # 8 MiB per f32 buffer
_VMEM_LIMIT = 40 * 1024 * 1024      # 2 bufs x (in + out) x 8 MiB = 32 MiB < 40 MiB

_PI = math.pi

# Odd Taylor coefficients for sin(y) on y in [-pi/2, pi/2]; max abs error ~6e-8.
_S3 = -1.0 / 6.0
_S5 = 1.0 / 120.0
_S7 = -1.0 / 5040.0
_S9 = 1.0 / 362880.0
_S11 = -1.0 / 39916800.0


def _round_up(x, m):
    return ((x + m - 1) // m) * m


def _cosine_cutoff_kernel(d_ref, o_ref, *, scale, offset, use_lower):
    # Upcast to f32; result cast back to the input dtype only at the store.
    d = d_ref[...].astype(jnp.float32)
    # In-range arguments lie in [0, pi] (lower == 0) or [-pi, pi] (lower > 0,
    # the 2*pi shift is folded into `offset`).  `d` is dead after this line.
    arg = d * scale + offset

    # Mask from the scaled argument (compares against constants).
    if use_lower:
        mask = jnp.logical_and(arg > -_PI, arg < _PI)
    else:
        mask = arg < _PI

    # Bounded-domain cosine: clamp first (protects ragged/garbage lanes), then
    #   cos(t) = -sin(|t| - pi/2),   |t| - pi/2 in [-pi/2, pi/2]
    #   0.5 * (cos(t) + 1) = 0.5 * (1 - sin(y))
    t = jnp.clip(arg, -_PI, _PI)
    y = jnp.abs(t) - (0.5 * _PI)
    y2 = y * y
    s = y * (1.0 + y2 * (_S3 + y2 * (_S5 + y2 * (_S7 + y2 * (_S9 + y2 * _S11)))))
    c = 0.5 * (1.0 - s)

    o_ref[...] = jnp.where(mask, c, 0.0).astype(o_ref.dtype)


def cosine_cutoff(distances, cutoff_lower=0.0, cutoff_upper=5.0, *, block_elems=None):
    """Elementwise cosine cutoff, exact semantics of torchmdnet CosineCutoff.forward."""
    orig_shape = distances.shape
    orig_dtype = distances.dtype
    flat = distances.reshape(-1)    # no-op for the usual 1-D input
    n = flat.shape[0]
    if n == 0:
        return jnp.zeros(orig_shape, orig_dtype)

    cutoff_lower = float(cutoff_lower)
    cutoff_upper = float(cutoff_upper)
    if cutoff_lower > 0.0:
        # pi*(2*(d-L)/(U-L) + 1) - 2*pi  ==  d*scale + offset,  in [-pi, pi] in-range
        scale = 2.0 * math.pi / (cutoff_upper - cutoff_lower)
        offset = -math.pi * (cutoff_upper + cutoff_lower) / (cutoff_upper - cutoff_lower)
        use_lower = True
    else:
        # d * pi / upper,  in [0, pi] in-range
        scale = math.pi / cutoff_upper
        offset = 0.0
        use_lower = False

    if block_elems is None:
        # Multiple of 1024, capped at 8 MiB/f32; aim for >= 2 grid programs so
        # v7x's second TensorCore gets work on mid-sized inputs.
        target = _round_up(pl.cdiv(n, 2), _TILE)
        block_elems = max(_TILE, min(_MAX_BLOCK_ELEMS, target))
    else:
        block_elems = max(_TILE, _round_up(int(block_elems), _TILE))

    kernel = functools.partial(
        _cosine_cutoff_kernel, scale=scale, offset=offset, use_lower=use_lower
    )
    cparams = pltpu.CompilerParams(
        dimension_semantics=("parallel",),
        vmem_limit_bytes=_VMEM_LIMIT,
    )

    if n % _LANES == 0:
        # 2-D lane-dense view: free contiguous reshape -> full (8,128) vregs,
        # unmasked vst on all but (possibly) the ragged last block.
        rows = n // _LANES
        x2d = flat.reshape(rows, _LANES)
        max_block_rows = block_elems // _LANES      # multiple of 8
        if rows <= max_block_rows:
            block_rows = rows                       # single full-array block (always legal)
        else:
            block_rows = max_block_rows             # multiple of 8; ragged tail masked by Pallas
        grid = (pl.cdiv(rows, block_rows),)
        out = pl.pallas_call(
            kernel,
            out_shape=jax.ShapeDtypeStruct((rows, _LANES), orig_dtype),
            grid_spec=pltpu.PrefetchScalarGridSpec(
                num_scalar_prefetch=0,
                grid=grid,
                in_specs=[pl.BlockSpec((block_rows, _LANES), lambda i: (i, 0))],
                out_specs=pl.BlockSpec((block_rows, _LANES), lambda i: (i, 0)),
            ),
            compiler_params=cparams,
        )(x2d)
        return out.reshape(orig_shape)

    # Rank-1 fallback for ragged n: avoids a wrapper-side pad (which would be a
    # full extra HBM copy); Pallas masks the ragged last block.
    if n <= block_elems:
        block = n                                   # single full-array block
    else:
        block = block_elems
    grid = (pl.cdiv(n, block),)
    out = pl.pallas_call(
        kernel,
        out_shape=jax.ShapeDtypeStruct((n,), orig_dtype),
        grid_spec=pltpu.PrefetchScalarGridSpec(
            num_scalar_prefetch=0,
            grid=grid,
            in_specs=[pl.BlockSpec((block,), lambda i: (i,))],
            out_specs=pl.BlockSpec((block,), lambda i: (i,)),
        ),
        compiler_params=cparams,
    )(flat)
    return out.reshape(orig_shape)


def _reference(distances, cutoff_lower=0.0, cutoff_upper=5.0):
    d = distances
    if cutoff_lower > 0.0:
        c = 0.5 * (
            jnp.cos(
                math.pi
                * (2.0 * (d - cutoff_lower) / (cutoff_upper - cutoff_lower) + 1.0)
            )
            + 1.0
        )
        c = c * (d < cutoff_upper).astype(d.dtype)
        c = c * (d > cutoff_lower).astype(d.dtype)
        return c
    else:
        c = 0.5 * (jnp.cos(d * math.pi / cutoff_upper) + 1.0)
        c = c * (d < cutoff_upper).astype(d.dtype)
        return c


if __name__ == "__main__":
    base_key = jax.random.PRNGKey(0)
    key1, key2, key3 = jax.random.split(base_key, 3)

    # 1) Lane-aligned input (2048 = 16 rows x 128 lanes) -> 2-D path, grid of 2.
    distances = jax.random.uniform(
        key1, (2048,), dtype=jnp.float32, minval=0.0, maxval=6.0
    )
    out_default = jax.block_until_ready(cosine_cutoff(distances, 0.0, 5.0))
    ref_default = _reference(distances, 0.0, 5.0)

    # 2) Nonzero lower-cutoff branch on the same input.
    out_lower = jax.block_until_ready(cosine_cutoff(distances, 1.0, 5.0))
    ref_lower = _reference(distances, 1.0, 5.0)

    # 3) Ragged length (not a multiple of 128) -> rank-1 fallback path.
    distances_ragged = jax.random.uniform(
        key2, (1000,), dtype=jnp.float32, minval=0.0, maxval=6.0
    )
    out_ragged = jax.block_until_ready(cosine_cutoff(distances_ragged, 0.5, 5.0))
    ref_ragged = _reference(distances_ragged, 0.5, 5.0)

    # 4) Lane-aligned multi-block with ragged last block (20 rows, 8-row blocks).
    distances_multi = jax.random.uniform(
        key3, (2560,), dtype=jnp.float32, minval=0.0, maxval=6.0
    )
    out_multi = jax.block_until_ready(
        cosine_cutoff(distances_multi, 1.0, 5.0, block_elems=1024)
    )
    ref_multi = _reference(distances_multi, 1.0, 5.0)

    assert out_default.shape == distances.shape
    assert out_default.dtype == distances.dtype
    assert jnp.allclose(out_default, ref_default, atol=1e-5, rtol=1e-5)
    assert jnp.allclose(out_lower, ref_lower, atol=1e-5, rtol=1e-5)
    assert out_ragged.shape == distances_ragged.shape
    assert jnp.allclose(out_ragged, ref_ragged, atol=1e-5, rtol=1e-5)
    assert out_multi.shape == distances_multi.shape
    assert jnp.allclose(out_multi, ref_multi, atol=1e-5, rtol=1e-5)

    print("KERNEL_OK")
</pallas_src>

<mosaic_0001>
module attributes {stable_mosaic.version = 11 : i64} {
  func.func @_cosine_cutoff_kernel(%arg0: i32, %arg1: memref<8x128xf32, #tpu.memory_space<vmem>>, %arg2: memref<8x128xf32, #tpu.memory_space<vmem>>) attributes {dimension_semantics = [#tpu.dimension_semantics<parallel>], iteration_bounds = array<i64: 2>, scalar_prefetch = 0 : i64, scratch_operands = 0 : i64, tpu.core_type = #tpu.core_type<tc>, window_params = [{transform_indices = @transform_0, window_bounds = array<i64: 8, 128>}, {transform_indices = @transform_1, window_bounds = array<i64: 8, 128>}]} {
    %c0 = arith.constant 0 : index
    %c0_0 = arith.constant 0 : index
    %0 = vector.load %arg1[%c0, %c0_0] : memref<8x128xf32, #tpu.memory_space<vmem>>, vector<8x128xf32>
    %cst = arith.constant 0.628318548 : f32
    %1 = vector.broadcast %cst : f32 to vector<8x128xf32>
    %2 = arith.mulf %0, %1 : vector<8x128xf32>
    %cst_1 = arith.constant 0.000000e+00 : f32
    %3 = vector.broadcast %cst_1 : f32 to vector<8x128xf32>
    %4 = arith.addf %2, %3 : vector<8x128xf32>
    %cst_2 = arith.constant 3.14159274 : f32
    %5 = vector.broadcast %cst_2 : f32 to vector<8x128xf32>
    %6 = arith.cmpf olt, %4, %5 : vector<8x128xf32>
    %cst_3 = arith.constant -3.14159274 : f32
    %cst_4 = arith.constant 3.14159274 : f32
    %7 = vector.broadcast %cst_3 : f32 to vector<8x128xf32>
    %8 = arith.maximumf %7, %4 : vector<8x128xf32>
    %9 = vector.broadcast %cst_4 : f32 to vector<8x128xf32>
    %10 = arith.minimumf %9, %8 : vector<8x128xf32>
    %11 = math.absf %10 : vector<8x128xf32>
    %cst_5 = arith.constant 1.57079637 : f32
    %12 = vector.broadcast %cst_5 : f32 to vector<8x128xf32>
    %13 = arith.subf %11, %12 : vector<8x128xf32>
    %14 = arith.mulf %13, %13 : vector<8x128xf32>
    %cst_6 = arith.constant -2.50521079E-8 : f32
    %15 = vector.broadcast %cst_6 : f32 to vector<8x128xf32>
    %16 = arith.mulf %14, %15 : vector<8x128xf32>
    %cst_7 = arith.constant 2.75573188E-6 : f32
    %17 = vector.broadcast %cst_7 : f32 to vector<8x128xf32>
    %18 = arith.addf %17, %16 : vector<8x128xf32>
    %19 = arith.mulf %14, %18 : vector<8x128xf32>
    %cst_8 = arith.constant -1.98412701E-4 : f32
    %20 = vector.broadcast %cst_8 : f32 to vector<8x128xf32>
    %21 = arith.addf %20, %19 : vector<8x128xf32>
    %22 = arith.mulf %14, %21 : vector<8x128xf32>
    %cst_9 = arith.constant 0.00833333377 : f32
    %23 = vector.broadcast %cst_9 : f32 to vector<8x128xf32>
    %24 = arith.addf %23, %22 : vector<8x128xf32>
    %25 = arith.mulf %14, %24 : vector<8x128xf32>
    %cst_10 = arith.constant -0.166666672 : f32
    %26 = vector.broadcast %cst_10 : f32 to vector<8x128xf32>
    %27 = arith.addf %26, %25 : vector<8x128xf32>
    %28 = arith.mulf %14, %27 : vector<8x128xf32>
    %cst_11 = arith.constant 1.000000e+00 : f32
    %29 = vector.broadcast %cst_11 : f32 to vector<8x128xf32>
    %30 = arith.addf %29, %28 : vector<8x128xf32>
    %31 = arith.mulf %13, %30 : vector<8x128xf32>
    %cst_12 = arith.constant 1.000000e+00 : f32
    %32 = vector.broadcast %cst_12 : f32 to vector<8x128xf32>
    %33 = arith.subf %32, %31 : vector<8x128xf32>
    %cst_13 = arith.constant 5.000000e-01 : f32
    %34 = vector.broadcast %cst_13 : f32 to vector<8x128xf32>
    %35 = arith.mulf %34, %33 : vector<8x128xf32>
    %cst_14 = arith.constant 0.000000e+00 : f32
    %36 = vector.broadcast %cst_14 : f32 to vector<8x128xf32>
    %37 = arith.select %6, %35, %36 : vector<8x128xi1>, vector<8x128xf32>
    %c0_15 = arith.constant 0 : index
    %c0_16 = arith.constant 0 : index
    %38 = vector.load %arg2[%c0_15, %c0_16] : memref<8x128xf32, #tpu.memory_space<vmem>>, vector<8x128xf32>
    tpu.vector_store %arg2[%c0_15, %c0_16], %37 {strides = array<i32>} : memref<8x128xf32, #tpu.memory_space<vmem>>, vector<8x128xf32>,
    return
  }
  func.func @transform_0(%arg0: i32) -> (i32, i32) {
    %c0_i32 = arith.constant 0 : i32
    %c0_i32_0 = arith.constant 0 : i32
    return %arg0, %c0_i32 : i32, i32
  }
  func.func @transform_1(%arg0: i32) -> (i32, i32) {
    %c0_i32 = arith.constant 0 : i32
    %c0_i32_0 = arith.constant 0 : i32
    return %arg0, %c0_i32 : i32, i32
  }
}

</mosaic_0001>

<bundles_post_ra>
// kernel: tpu_custom_call.1
= control target key start
LH: loop header
LB: loop body
LE: loop exit
PB: predicated region body
PF: predicated region fallthrough
CT: control target
= control target key end

     0   :  { %6 = vsyncpa [#allocation3], 0  ;;  %s539_s0 = inlined_call_operand.hbm [shape: f32[16,128], index: 0, kind: input, shape index: {}]   ;;  %s540_s1 = inlined_call_operand.hbm [shape: f32[16,128], index: 1, kind: output, shape index: {}]  }
   0x1   :  { %8 = vsyncpa [#allocation3 + $0x1], 0 }
   0x2   :  { %9 = vsyncpa [#allocation4], 0 }
   0x3   :  { %11 = vsyncpa [#allocation4 + $0x1], 0  ;;  %s412_s6 = smov 0   ;;  %s414_s7 = smov 0  }
   0x4   :  { %s416_s8 = smov 0   ;;  %s418_s9 = smov 0  }
   0x5 LB: > { %s433_s10 = sadd.s32 4294967295, %s400_s9   ;;  %s244_s11 = sadd.s32 4294967294, %s400_s9   ;;  %s400_s9 = sphi %s418_s9, %s550_s9   ;;  %s396_s8 = sphi %s416_s8, %s549_s8   ;;  %s392_s7 = sphi %s414_s7, %s548_s7   ;;  %s388_s6 = sphi %s412_s6, %s547_s6  }
   0x6   : > { %s437_s12 = sadd.s32 1, %s400_s9   ;;  %s24_s13 = sadd.s32 1, %s396_s8 }
   0x7   : > { %s21_s14 = ssub.s32 %s400_s9, %s437_s12  ;;  %p31_p0 = scmp.ne.s32.totalorder %s396_s8, %s392_s7 }
   0x8   : > { %p22_p1 = scmp.eq.s32.totalorder %s21_s14, 0  ;;  %p32_p2 = scmp.eq.s32.totalorder %s400_s9, 0 }
   0x9   : > { %p37_p3 = scmp.ne.s32.totalorder %s392_s7, %s388_s6  ;;  %p38_p4 = scmp.eq.s32.totalorder %s433_s10, 0 }
   0xa   : > { %s449_s15 = scalar_select %p22_p1, %s396_s8, %s24_s13  }
   0xb   : > { %p451_p5 = por %p32_p2, %p31_p0  ;;  %p455_p6 = por %p38_p4, %p37_p3 }
   0xc   : > { %p61_p7 = scmp.eq.s32.totalorder %s433_s10, 1  ;;  %p67_p8 = scmp.eq.s32.totalorder %s244_s11, 1 }
   0xd   : > { %p270_p10 = scmp.lt.s32.totalorder %s400_s9, 2  ;;  %s87_s20 = sand.u32 1, %s396_s8  }
   0xe   : > { %p462_p11 = por %p61_p7, %p31_p0  ;;  %p466_p12 = por %p67_p8, %p37_p3 }
   0xf   : > { %s248_s21 = sshll.u32 %s400_s9, 3  ;;  %s247_s22 = sshll.u32 %s87_s20, 3 }
  0x10   : > { %s95_s25 = scalar_lea.hbm %s539_s0, %s248_s21  ;;  %s91_s27 = scalar_lea.vmem [#allocation2], %s247_s22 }
  0x11   : > { %s97_s26 = sshll.u32 %s95_s25, 4  ;;  %s99_s28 = sshll.u32 %s91_s27, 4  ;;  %s98_s26 = int_to_ptr.hbm [resolvable:$true] %s97_s26  ;;  %s100_s28 = int_to_ptr.vmem [resolvable:$true] %s99_s28 }
  0x12   : > { %p477_p13 = pnand %p270_p10, %p451_p5  ;;  %p249_p0 = scmp.ge.s32.totalorder %s400_s9, 1 }
  0x13   : > { %p104_p1 = scmp.lt.s32.totalorder %s400_s9, 3  ;;  %s88_s30 = scalar_lea.sflag [#allocation3], %s87_s20 }
  0x14   : > { %s304_s2 = sshra.s32 %s98_s26, 4  ;;  %p308_p3 = pneg %p477_p13  ;;  %s305_s2 = int_to_ptr.hbm [resolvable:$true] %s304_s2 }
  0x15   : > { %s306_s3 = scalar_lea.hbm %s305_s2, 8  ;;  %s311_s11 = scalar_lea.hbm %s539_s0, 16 }
  0x16   : > { %p307_p2 = scmp.ne.s32.totalorder %s305_s2, %s306_s3  ;;  %p312_p5 = scmp.lt.s32.totalorder %s305_s2, %s539_s0 }
  0x17   : > { %p313_p8 = scmp.lt.s32.totalorder %s311_s11, %s306_s3 }
  0x18   : > { %p309_p4 = pnand %p308_p3, %p307_p2 }
  0x19   : > { %p314_p10 = por %p313_p8, %p312_p5 }
  0x1a   : > { %p310_p7 = pneg %p309_p4 }
  0x1c   : > { %p315_p9 = pnand %p314_p10, %p310_p7 }
  0x1e   : > { %318 = shalt.err (!%p315_p9)
}
  0x1f   : > { %265 = dma.hbm_to_vmem [thread:$0]  (!%p477_p13), %s98_s26, 128, %s100_s28, %s88_s30  }
  0x20   : > { %p105_p2 = pnand %p249_p0, %p104_p1 }
  0x21   : > { %s498_s16 = sand.u32 (!%p105_p2), 1, %s392_s7  }
  0x22   : > { %108 = sbr.rel (%p105_p2) target bundleno = 81 (0x51), region = 24  ;;  %s250_s20 = sshll.u32 (!%p105_p2), %s498_s16, 3 }
  0x23   : > { %s111_s21 = scalar_lea.sflag (!%p105_p2), [#allocation3], %s498_s16  ;;  %s114_s22 = scalar_lea.vmem (!%p105_p2), [#allocation2], %s250_s20 }
  0x27   : > { %379 = dma.done.wait (%p455_p6), %s111_s21, 128  }
  0x28   : > { %381 = vsyncadd (%p455_p6), %s111_s21, 4294967168  ;;  %v134_v0 = vld [vmem:[%s114_s22] sm:$0xff]  ;;  %s255_s23 = sshll.u32 %s433_s10, 3  ;;  %s133_s26 = scalar_lea.vmem [#allocation5], %s250_s20 }
  0x29   : > { %v135_v1 = vmul.f32 0.62831855, %v134_v0  ;;  %s169_s25 = scalar_lea.hbm %s540_s1, %s255_s23  ;;  %s171_s27 = sshll.u32 %s133_s26, 4  ;;  %s172_s27 = int_to_ptr.vmem [resolvable:$true] %s171_s27 }
  0x2a   : > { %s173_s28 = sshll.u32 %s169_s25, 4  ;;  %s159_s29 = scalar_lea.sflag [#allocation4], %s498_s16  ;;  %s174_s28 = int_to_ptr.hbm [resolvable:$true] %s173_s28 }
  0x2b   : > { %v252_v2 = vclamps-f32 %v135_v1, 3.1415927  ;;  %vm137_vm0 = vcmp.lt.f32.partialorder %v135_v1, 3.1415927  ;;  %s348_s30 = sshra.s32 %s174_s28, 4  ;;  %s354_s4 = scalar_lea.hbm %s540_s1, 16  ;;  %s349_s30 = int_to_ptr.hbm [resolvable:$true] %s348_s30 }
  0x2c   : > { %s350_s10 = scalar_lea.hbm %s349_s30, 8  ;;  %p355_p0 = scmp.lt.s32.totalorder %s349_s30, %s540_s1 }
  0x2d   : > { %v140_v3 = vand.u32 2147483647, %v252_v2  ;;  %p351_p6 = scmp.ne.s32.totalorder %s349_s30, %s350_s10  ;;  %p356_p1 = scmp.lt.s32.totalorder %s354_s4, %s350_s10 }
  0x2f   : > { %v253_v4 = vadd.f32 -1.5707964, %v140_v3  ;;  %p352_p9 = pnand %p351_p6, %p462_p11  ;;  %p357_p3 = por %p356_p1, %p355_p0 }
  0x31   : > { %v142_v5 = vmul.f32 %v253_v4, %v253_v4  ;;  %p353_p13 = pneg %p352_p9 }
  0x33   : > { %v143_v6 = vmul.f32 -2.5052108e-08, %v142_v5  ;;  %p358_p4 = pnand %p357_p3, %p353_p13 }
  0x35   : > { %v144_v7 = vadd.f32 2.7557319e-06, %v143_v6 }
  0x37   : > { %v145_v8 = vmul.f32 %v144_v7, %v142_v5 }
  0x39   : > { %v146_v9 = vadd.f32 -0.0001984127, %v145_v8 }
  0x3b   : > { %v147_v10 = vmul.f32 %v146_v9, %v142_v5 }
  0x3d   : > { %v148_v11 = vadd.f32 0.008333334, %v147_v10 }
  0x3f   : > { %v149_v12 = vmul.f32 %v148_v11, %v142_v5 }
  0x41   : > { %v150_v13 = vadd.f32 -0.16666667, %v149_v12 }
  0x43   : > { %v151_v14 = vmul.f32 %v150_v13, %v142_v5 }
  0x45   : > { %v152_v15 = vadd.f32 1.0, %v151_v14 }
  0x47   : > { %v153_v16 = vmul.f32 %v253_v4, %v152_v15 }
  0x49   : > { %v154_v17 = vsub.f32 1.0, %v153_v16 }
  0x4b   : > { %v155_v18 = vmul.f32 0.5, %v154_v17 }
  0x4d   : > { %v156_v19 = vsel %vm137_vm0, %v155_v18, 0.0 }
  0x4e   : > { %157 = vst [vmem:[%s133_s26] sm:$0xff] %v156_v19 }
  0x4f   : > { %361 = shalt.err (!%p358_p4)
}
  0x50   : > { %260 = dma.vmem_to_hbm [thread:$0]  (%p462_p11), %s172_s27, 128, %s174_s28, %s159_s29  }
  0x51 PF: > { %s185_s13 = sand.u32 1, %s388_s6   ;;  %p546_p7 = scmp.ge.s32.totalorder %s400_s9, 2 }
  0x52   : > { %s186_s14 = scalar_lea.sflag [#allocation4], %s185_s13 }
  0x53   : > { %p267_p5 = pnand %p546_p7, %p466_p12 }
  0x55   : > { %p268_p8 = pneg %p267_p5 }
  0x57   : > { %383 = dma.done.wait (%p268_p8), %s186_s14, 128  }
  0x58   : > { %385 = vsyncadd (%p268_p8), %s186_s14, 4294967168  ;;  %p14_p10 = scmp.ge.s32.totalorder %s437_s12, 4   ;;  %s547_s6 = smov %s392_s7 }
  0x59   : > { %s548_s7 = smov %s396_s8  ;;  %s549_s8 = smov %s449_s15 }
  0x5a   : > { %s550_s9 = smov %s437_s12  ;;  %16 = sbr.rel (!%p14_p10) target bundleno = 5 (0x5), region = 69 }
  0x5f   :  { %192 = vsyncpa [#allocation3], 1 }
  0x60   :  { %194 = vsyncpa [#allocation3 + $0x1], 1 }
  0x61   :  { %195 = vsyncpa [#allocation4], 1 }
  0x62   :  { %197 = vsyncpa [#allocation4 + $0x1], 1 }

</bundles_post_ra>
